<compile_context>
chip_gen: v7x
topology: tpu7x:2x2x1
jax: 0.10.0
libtpu: 0.0.40
codegen_flags: <defaults>
</compile_context>

<pallas_src>
import functools

import jax
import jax.numpy as jnp
from jax.experimental import pallas as pl
from jax.experimental.pallas import tpu as pltpu


def _round_up(x: int, m: int) -> int:
    return -(-x // m) * m


def _yolo_head_kernel(x_ref, w_ref, b_ref, o_ref):
    # x_ref: (N, C_in, t_hw)   spatial on lanes
    # w_ref: (C_out, C_in)     grid-resident (constant index_map)
    # b_ref: (C_out, 1)
    # o_ref: (N, C_out, t_hw)  spatial on lanes -> lane-dense stores
    w = w_ref[...]
    b = b_ref[...]
    # jnp.dot is not batched; a short static loop over the (small) folded
    # batch keeps every matmul 2-D and every store lane-dense, with no
    # in-kernel transposes (einsum 'oc,nct->not' would insert one).
    for n in range(x_ref.shape[0]):
        acc = jnp.dot(w, x_ref[n], preferred_element_type=jnp.float32)
        o_ref[n] = (acc + b).astype(o_ref.dtype)


@functools.partial(jax.jit, static_argnames=("t_hw", "vmem_bytes"))
def _yolo_head_call(x_nchw, weight, bias, *, t_hw, vmem_bytes):
    N, C_in, H, W = x_nchw.shape
    C_out = weight.shape[0]
    HW = H * W

    # Pure views — no transposes, no padding, no extra HBM passes.
    x3d = x_nchw.reshape(N, C_in, HW)
    w2d = weight.reshape(C_out, C_in)
    b2d = bias.reshape(C_out, 1)

    n_spatial = pl.cdiv(HW, t_hw)

    out3d = pl.pallas_call(
        _yolo_head_kernel,
        out_shape=jax.ShapeDtypeStruct((N, C_out, HW), x_nchw.dtype),
        grid=(n_spatial,),
        in_specs=[
            pl.BlockSpec((N, C_in, t_hw), lambda s: (0, 0, s)),
            pl.BlockSpec((C_out, C_in), lambda s: (0, 0)),
            pl.BlockSpec((C_out, 1), lambda s: (0, 0)),
        ],
        out_specs=pl.BlockSpec((N, C_out, t_hw), lambda s: (0, 0, s)),
        compiler_params=pltpu.CompilerParams(
            dimension_semantics=("parallel",),
            vmem_limit_bytes=vmem_bytes,
        ),
    )(x3d, w2d, b2d)

    return out3d.reshape(N, C_out, H, W)        # NCHW, like PyTorch


def yolo_head_forward(x_nchw, weight, bias):
    """YOLOHead forward.  x: (N, C_in, H, W), weight: (C_out, C_in, 1, 1), bias: (C_out,)."""
    N, C_in, H, W = x_nchw.shape
    C_out = weight.shape[0]
    HW = H * W
    itemsize = jnp.dtype(x_nchw.dtype).itemsize

    # --- VMEM budget (generation-aware; conservative for v7x's 64 MiB) -----
    try:
        phys_vmem = int(pltpu.get_tpu_info().vmem_capacity_bytes)
    except Exception:
        phys_vmem = 64 << 20                 # assume smallest (v7x per-TC)
    vmem_budget = min(phys_vmem // 4, 24 << 20)

    # --- spatial tile selection ---------------------------------------------
    hw128 = _round_up(HW, 128)
    c_in_p = _round_up(C_in, 8)              # f32 sublane padding
    c_out_p = _round_up(C_out, 8)
    # double-buffered input + output tiles, whole batch folded per block
    per_lane_vmem = 2 * N * (c_in_p + c_out_p) * itemsize
    t_vmem = max(128, (vmem_budget // per_lane_vmem) // 128 * 128)
    # ~4 MB of HBM traffic per grid step hides the ~0.35us/step overhead
    per_lane_hbm = N * (C_in + C_out) * itemsize
    t_target = max(128, ((4 << 20) // per_lane_hbm) // 128 * 128)
    t_hw = min(hw128, t_vmem, t_target)

    # v7x megacore: keep >=2 spatial programs when tiles stay >=512 lanes
    # (near-neutral on single-TC v5e/v6e, up to 2x on v7x).
    if t_hw >= HW and hw128 >= 1024:
        t_hw = _round_up(hw128 // 2, 128)
    if t_hw >= HW:
        t_hw = HW                            # single full-extent last-dim block

    # --- honest VMEM limit ----------------------------------------------------
    t_lanes = _round_up(t_hw, 128)
    tile_bytes = 2 * N * (c_in_p + c_out_p) * t_lanes * itemsize   # 2-deep in+out
    param_bytes = 2 * (c_out_p * _round_up(C_in, 128) + c_out_p * 128) * itemsize
    vmem_bytes = int(min(max(tile_bytes + param_bytes + (2 << 20), 4 << 20), 32 << 20))

    return _yolo_head_call(x_nchw, weight, bias, t_hw=int(t_hw), vmem_bytes=vmem_bytes)


if __name__ == "__main__":
    # Small shapes consistent with the module's forward.
    batch, in_channels, spatial = 2, 4, 16
    num_classes = 3
    num_anchors = 3
    output_size = num_anchors * (5 + num_classes)            # 24

    key = jax.random.PRNGKey(0)
    kx, kw, kb = jax.random.split(key, 3)

    x = jax.random.normal(kx, (batch, in_channels, spatial, spatial), jnp.float32)
    # Deterministic synthetic parameters (no checkpoint load).
    weight = jax.random.normal(kw, (output_size, in_channels, 1, 1), jnp.float32) * 0.1
    bias = jax.random.normal(kb, (output_size,), jnp.float32) * 0.1

    out = yolo_head_forward(x, weight, bias)
    out = jax.block_until_ready(out)

    # Reference: plain-JAX 1x1 conv (channel einsum) + bias.
    ref = jnp.einsum("nchw,oc->nohw", x, weight.reshape(output_size, in_channels)) \
        + bias.reshape(1, output_size, 1, 1)
    assert out.shape == (batch, output_size, spatial, spatial)
    assert jnp.allclose(out, ref, atol=1e-5, rtol=1e-5)

    # Ragged-boundary check (HW not a multiple of 128, like a real 13x13 YOLO grid):
    x2 = jax.random.normal(kx, (1, in_channels, 13, 13), jnp.float32)
    out2 = jax.block_until_ready(yolo_head_forward(x2, weight, bias))
    ref2 = jnp.einsum("nchw,oc->nohw", x2, weight.reshape(output_size, in_channels)) \
        + bias.reshape(1, output_size, 1, 1)
    assert out2.shape == (1, output_size, 13, 13)
    assert jnp.allclose(out2, ref2, atol=1e-5, rtol=1e-5)

    print("KERNEL_OK")
</pallas_src>

<mosaic_0001>
module attributes {stable_mosaic.version = 11 : i64} {
  func.func @_yolo_head_kernel(%arg0: i32, %arg1: memref<2x4x256xf32, #tpu.memory_space<vmem>>, %arg2: memref<24x4xf32, #tpu.memory_space<vmem>>, %arg3: memref<24x1xf32, #tpu.memory_space<vmem>>, %arg4: memref<2x24x256xf32, #tpu.memory_space<vmem>>) attributes {dimension_semantics = [#tpu.dimension_semantics<parallel>], iteration_bounds = array<i64: 1>, scalar_prefetch = 0 : i64, scratch_operands = 0 : i64, tpu.core_type = #tpu.core_type<tc>, window_params = [{transform_indices = @transform_0, window_bounds = array<i64: 2, 4, 256>}, {pipeline_mode = #tpu.pipeline_mode<synchronous>, transform_indices = @transform_1, window_bounds = array<i64: 24, 4>}, {pipeline_mode = #tpu.pipeline_mode<synchronous>, transform_indices = @transform_2, window_bounds = array<i64: 24, 1>}, {transform_indices = @transform_3, window_bounds = array<i64: 2, 24, 256>}]} {
    %c0 = arith.constant 0 : index
    %c0_0 = arith.constant 0 : index
    %0 = vector.load %arg2[%c0, %c0_0] : memref<24x4xf32, #tpu.memory_space<vmem>>, vector<24x4xf32>
    %c0_1 = arith.constant 0 : index
    %c0_2 = arith.constant 0 : index
    %1 = vector.load %arg3[%c0_1, %c0_2] : memref<24x1xf32, #tpu.memory_space<vmem>>, vector<24x1xf32>
    %c0_3 = arith.constant 0 : index
    %c0_4 = arith.constant 0 : index
    %c0_5 = arith.constant 0 : index
    %2 = vector.load %arg1[%c0_3, %c0_4, %c0_5] : memref<2x4x256xf32, #tpu.memory_space<vmem>>, vector<1x4x256xf32>
    %3 = vector.shape_cast %2 : vector<1x4x256xf32> to vector<4x256xf32>
    %cst = arith.constant dense<0.000000e+00> : vector<24x256xf32>
    %4 = tpu.matmul %0, %3, %cst {dimension_numbers = #tpu.dot_dimension_numbers<[1], [0], [0], [1], [0, 0, 1, 1], [], []>} : vector<24x4xf32>, vector<4x256xf32>, vector<24x256xf32> -> vector<24x256xf32>
    %5 = vector.broadcast %1 : vector<24x1xf32> to vector<24x256xf32>
    %6 = arith.addf %4, %5 : vector<24x256xf32>
    %c0_6 = arith.constant 0 : index
    %c0_7 = arith.constant 0 : index
    %c0_8 = arith.constant 0 : index
    %7 = vector.load %arg4[%c0_6, %c0_7, %c0_8] : memref<2x24x256xf32, #tpu.memory_space<vmem>>, vector<1x24x256xf32>
    %8 = vector.shape_cast %7 : vector<1x24x256xf32> to vector<24x256xf32>
    %9 = vector.shape_cast %6 : vector<24x256xf32> to vector<1x24x256xf32>
    tpu.vector_store %arg4[%c0_6, %c0_7, %c0_8], %9 {strides = array<i32>} : memref<2x24x256xf32, #tpu.memory_space<vmem>>, vector<1x24x256xf32>,
    %c1 = arith.constant 1 : index
    %c0_9 = arith.constant 0 : index
    %c0_10 = arith.constant 0 : index
    %10 = vector.load %arg1[%c1, %c0_9, %c0_10] : memref<2x4x256xf32, #tpu.memory_space<vmem>>, vector<1x4x256xf32>
    %11 = vector.shape_cast %10 : vector<1x4x256xf32> to vector<4x256xf32>
    %cst_11 = arith.constant dense<0.000000e+00> : vector<24x256xf32>
    %12 = tpu.matmul %0, %11, %cst_11 {dimension_numbers = #tpu.dot_dimension_numbers<[1], [0], [0], [1], [0, 0, 1, 1], [], []>} : vector<24x4xf32>, vector<4x256xf32>, vector<24x256xf32> -> vector<24x256xf32>
    %13 = vector.broadcast %1 : vector<24x1xf32> to vector<24x256xf32>
    %14 = arith.addf %12, %13 : vector<24x256xf32>
    %c1_12 = arith.constant 1 : index
    %c0_13 = arith.constant 0 : index
    %c0_14 = arith.constant 0 : index
    %15 = vector.load %arg4[%c1_12, %c0_13, %c0_14] : memref<2x24x256xf32, #tpu.memory_space<vmem>>, vector<1x24x256xf32>
    %16 = vector.shape_cast %15 : vector<1x24x256xf32> to vector<24x256xf32>
    %17 = vector.shape_cast %14 : vector<24x256xf32> to vector<1x24x256xf32>
    tpu.vector_store %arg4[%c1_12, %c0_13, %c0_14], %17 {strides = array<i32>} : memref<2x24x256xf32, #tpu.memory_space<vmem>>, vector<1x24x256xf32>,
    return
  }
  func.func @transform_0(%arg0: i32) -> (i32, i32, i32) {
    %c0_i32 = arith.constant 0 : i32
    %c0_i32_0 = arith.constant 0 : i32
    %c0_i32_1 = arith.constant 0 : i32
    return %c0_i32, %c0_i32_0, %arg0 : i32, i32, i32
  }
  func.func @transform_1(%arg0: i32) -> (i32, i32) {
    %c0_i32 = arith.constant 0 : i32
    %c0_i32_0 = arith.constant 0 : i32
    %c0_i32_1 = arith.constant 0 : i32
    return %c0_i32, %c0_i32_0 : i32, i32
  }
  func.func @transform_2(%arg0: i32) -> (i32, i32) {
    %c0_i32 = arith.constant 0 : i32
    %c0_i32_0 = arith.constant 0 : i32
    %c0_i32_1 = arith.constant 0 : i32
    return %c0_i32, %c0_i32_0 : i32, i32
  }
  func.func @transform_3(%arg0: i32) -> (i32, i32, i32) {
    %c0_i32 = arith.constant 0 : i32
    %c0_i32_0 = arith.constant 0 : i32
    %c0_i32_1 = arith.constant 0 : i32
    return %c0_i32, %c0_i32_0, %arg0 : i32, i32, i32
  }
}

</mosaic_0001>

<bundles_post_ra>
// kernel: _yolo_head_call.1
= control target key start
LH: loop header
LB: loop body
LE: loop exit
PB: predicated region body
PF: predicated region fallthrough
CT: control target
= control target key end

     0   :  { %vm48_vm0 = vcmask 1043456   ;;  %v267_v2 = vmov 0.0   ;;  %v268_v5 = vmov 0   ;;  %vm38_vm1 = vcmask 31744   ;;  %s359_s0 = inlined_call_operand.vmem [shape: f32[2,4,256], index: 0, kind: input, shape index: {}]   ;;  %s360_s1 = inlined_call_operand.vmem [shape: f32[24,4], index: 1, kind: input, shape index: {}]   ;;  %s361_s2 = inlined_call_operand.vmem [shape: f32[24,1], index: 2, kind: input, shape index: {}]   ;;  %s362_s3 = inlined_call_operand.vmem [shape: f32[2,24,256], index: 3, kind: output, shape index: {}]  }
   0x1   :  { %v20_v0 = vld [vmem:[%s359_s0] sm:$0xff]  ;;  %v249_v1 = vld [vmem:[%s359_s0 + $0x8] sm:$0xff]  ;;  %117 = vmatprep.mubr.f32.mxu0 %v267_v2  ;;  %214 = vmatprep.mubr.f32.mxu1 %v267_v2  ;;  %v19_v9 = vld [vmem:[%s361_s2 + $0x10] sm:$0xff] }
   0x2   :  { %v37_v3 = vcombine.high %v20_v0, %v20_v0  ;;  %v145_v4 = vcombine.high %v249_v1, %v249_v1  ;;  %263 = vset.pattern.permute.xlu0 %v268_v5  ;;  %v17_v6 = vld [vmem:[%s361_s2] sm:$0xff]  ;;  %264 = vset.pattern.permute.xlu1 %v268_v5  ;;  %v18_v8 = vld [vmem:[%s361_s2 + $0x8] sm:$0xff]  ;;  %v16_v11 = vld [vmem:[%s360_s1 + $0x10] sm:$0xff] }
   0x3   :  { %v14_v7 = vld [vmem:[%s360_s1] sm:$0xff]  ;;  %23 = vperm.xlu0 %263, %v17_v6   ;;  %v15_v10 = vld [vmem:[%s360_s1 + $0x8] sm:$0xff]  ;;  %33 = vperm.xlu1 %264, %v19_v9  }
   0x4   :  { %244 = vmatprep.subr.msk.mxu0 %vm48_vm0, %v37_v3  ;;  %250 = vmatprep.subr.msk.mxu1 %vm48_vm0, %v145_v4 }
   0x5   :  { %245 = vmatpush1.msk.msra.mxu0 %vm48_vm0, %v20_v0  ;;  %251 = vmatpush1.msk.msra.mxu1 %vm48_vm0, %v249_v1 }
   0x6   :  { %246 = vmatmul.mubr.msk.f32.vlgmr.msra.gmra.mrb[0].mxu0 %vm38_vm1, %v14_v7  ;;  %252 = vmatmul.mubr.msk.f32.vlgmr.msra.gmra.mrb[0].mxu1 %vm38_vm1, %v14_v7 }
   0x7   :  { %123 = vmatprep.mubr.f32.mxu0 %v267_v2  ;;  %220 = vmatprep.mubr.f32.mxu1 %v267_v2 }
   0x8   :  { %28 = vperm.xlu0 %263, %v18_v8  }
   0xa   :  { %247 = vmatmul.mubr.msk.f32.gmra.mrb[2].mxu0 %vm38_vm1, %v15_v10  ;;  %253 = vmatmul.mubr.msk.f32.gmra.mrb[2].mxu1 %vm38_vm1, %v15_v10 }
   0xb   :  { %129 = vmatprep.mubr.f32.mxu0 %v267_v2  ;;  %226 = vmatprep.mubr.f32.mxu1 %v267_v2 }
   0xe   :  { %248 = vmatmul.mubr.msk.f32.gmra.mrb[4].mxu0 %vm38_vm1, %v16_v11  ;;  %254 = vmatmul.mubr.msk.f32.gmra.mrb[4].mxu1 %vm38_vm1, %v16_v11 }
  0x82   :  { %v24_v12 = vpop.permute.xlu0 %23  ;;  %v34_v30 = vpop.permute.xlu1 %33 }
  0x87   :  { %v29_v21 = vpop.permute.xlu0 %28 }
  0xd9   :  { %v119_v13 = vpop.f32.mrb[0].mxu0  ;;  %v216_v14 = vpop.f32.mrb[0].mxu1 }
  0xda   :  { %v120_v15 = vadd.f32 %v119_v13, %v24_v12  ;;  %v217_v16 = vadd.f32 %v216_v14, %v24_v12  ;;  %v121_v17 = vpop.f32.mrb[1].mxu0  ;;  %v218_v18 = vpop.f32.mrb[1].mxu1 }
  0xdb   :  { %v122_v19 = vadd.f32 %v121_v17, %v24_v12  ;;  %v219_v20 = vadd.f32 %v218_v18, %v24_v12 }
  0xdc   :  { %136 = vst [vmem:[%s362_s3] sm:$0xff] %v120_v15  ;;  %255 = vst [vmem:[%s362_s3 + $0x30] sm:$0xff] %v217_v16 }
  0xdd   :  { %137 = vst [vmem:[%s362_s3 + $0x8] sm:$0xff] %v122_v19  ;;  %256 = vst [vmem:[%s362_s3 + $0x38] sm:$0xff] %v219_v20  ;;  %v125_v22 = vpop.f32.mrb[2].mxu0  ;;  %v222_v23 = vpop.f32.mrb[2].mxu1 }
  0xde   :  { %v126_v24 = vadd.f32 %v125_v22, %v29_v21  ;;  %v223_v25 = vadd.f32 %v222_v23, %v29_v21  ;;  %v127_v26 = vpop.f32.mrb[3].mxu0  ;;  %v224_v27 = vpop.f32.mrb[3].mxu1 }
  0xdf   :  { %v128_v28 = vadd.f32 %v127_v26, %v29_v21  ;;  %v225_v29 = vadd.f32 %v224_v27, %v29_v21 }
  0xe0   :  { %138 = vst [vmem:[%s362_s3 + $0x10] sm:$0xff] %v126_v24  ;;  %257 = vst [vmem:[%s362_s3 + $0x40] sm:$0xff] %v223_v25 }
  0xe1   :  { %139 = vst [vmem:[%s362_s3 + $0x18] sm:$0xff] %v128_v28  ;;  %258 = vst [vmem:[%s362_s3 + $0x48] sm:$0xff] %v225_v29  ;;  %v131_v31 = vpop.f32.mrb[4].mxu0  ;;  %v228_v32 = vpop.f32.mrb[4].mxu1 }
  0xe2   :  { %v132_v33 = vadd.f32 %v131_v31, %v34_v30  ;;  %v229_v34 = vadd.f32 %v228_v32, %v34_v30  ;;  %v133_v35 = vpop.f32.mrb[5].mxu0  ;;  %v230_v36 = vpop.f32.mrb[5].mxu1 }
  0xe3   :  { %v134_v37 = vadd.f32 %v133_v35, %v34_v30  ;;  %v231_v38 = vadd.f32 %v230_v36, %v34_v30 }
  0xe4   :  { %140 = vst [vmem:[%s362_s3 + $0x20] sm:$0xff] %v132_v33  ;;  %259 = vst [vmem:[%s362_s3 + $0x50] sm:$0xff] %v229_v34 }
  0xe5   :  { %141 = vst [vmem:[%s362_s3 + $0x28] sm:$0xff] %v134_v37  ;;  %260 = vst [vmem:[%s362_s3 + $0x58] sm:$0xff] %v231_v38 }

</bundles_post_ra>
